<compile_context>
chip_gen: v6e
topology: v6e:2x2x1
jax: 0.10.0
libtpu: 0.0.40
codegen_flags: <defaults>
</compile_context>

<pallas_src>
import jax
import jax.numpy as jnp
from jax.experimental import pallas as pl
from jax.experimental.pallas import tpu as pltpu


IN_FEATURES = 400
OUT_FEATURES = 1


def _round_up(n, m):
    return ((n + m - 1) // m) * m


def _critic_kernel(x_ref, w_ref, b_ref, o_ref):
    # x_ref: [TB, 400] (VMEM), w_ref: [1, 400] (VMEM, resident),
    # b_ref: [1, 1] (SMEM scalar), o_ref: [TB, 1]
    x = x_ref[...]
    w = w_ref[...]
    # VPU multiply + XLU lane reduce; f32 accumulation.
    acc = jnp.sum(x * w, axis=-1, keepdims=True)
    o_ref[...] = (acc + b_ref[0, 0]).astype(o_ref.dtype)


def critic_forward(x, w_row, b, *, tile_batch=512):
    """Forward pass of Critic.

    x:     [B, 400] f32
    w_row: [1, 400] f32  (fc_value.weight, PyTorch layout [out, in] with out=1)
    b:     [1, 1]   f32  (fc_value.bias)
    returns [B, 1] f32
    """
    batch = x.shape[0]

    # Fixed batch tile (multiple of 8 sublanes), capped so VMEM use is constant.
    tb = min(tile_batch, _round_up(batch, 8))
    padded = _round_up(batch, tb)
    if padded != batch:
        x = jnp.pad(x, ((0, padded - batch), (0, 0)))

    out = pl.pallas_call(
        _critic_kernel,
        out_shape=jax.ShapeDtypeStruct((padded, OUT_FEATURES), jnp.float32),
        grid_spec=pl.GridSpec(
            grid=(padded // tb,),
            in_specs=[
                # Streamed batch tiles of x.
                pl.BlockSpec((tb, IN_FEATURES), lambda i: (i, 0)),
                # Weight row: constant index_map -> stays resident in VMEM.
                pl.BlockSpec((1, IN_FEATURES), lambda i: (0, 0)),
                # Bias: scalar in SMEM (no VMEM tile / DMA per step).
                pl.BlockSpec(memory_space=pltpu.MemorySpace.SMEM),
            ],
            out_specs=pl.BlockSpec((tb, OUT_FEATURES), lambda i: (i, 0)),
        ),
        compiler_params=pltpu.CompilerParams(
            dimension_semantics=("parallel",),
        ),
    )(x, w_row, b)

    return out[:batch]


def init_critic_params(key):
    """Deterministic parameter init mirroring the PyTorch module.

    fc_value.weight: [1, 400] with xavier_normal_  (std = sqrt(2/(400+1)))
    fc_value.bias:   [1]      (PyTorch default uniform; deterministic here)
    Returns weight as [1, 400] (row) and bias as [1, 1].
    """
    k_w, k_b = jax.random.split(key)
    std = (2.0 / (IN_FEATURES + OUT_FEATURES)) ** 0.5
    w = jax.random.normal(k_w, (OUT_FEATURES, IN_FEATURES), jnp.float32) * std
    bound = 1.0 / (IN_FEATURES ** 0.5)
    b = jax.random.uniform(
        k_b, (OUT_FEATURES,), jnp.float32, minval=-bound, maxval=bound
    )
    return w, b.reshape(1, OUT_FEATURES)


if __name__ == "__main__":
    key = jax.random.PRNGKey(0)
    k_params, k_x = jax.random.split(key)

    w_row, b = init_critic_params(k_params)

    batch = 8
    x = jax.random.normal(k_x, (batch, IN_FEATURES), jnp.float32)

    value = critic_forward(x, w_row, b)
    value = jax.block_until_ready(value)

    # Sanity check against plain-JAX reference (x @ W.T + b).
    ref = x @ w_row.T + b
    assert value.shape == (batch, OUT_FEATURES)
    assert jnp.allclose(value, ref, atol=1e-5, rtol=1e-5)

    # Also exercise a batch that is not a multiple of the tile / sublane size.
    x2 = jax.random.normal(jax.random.PRNGKey(1), (13, IN_FEATURES), jnp.float32)
    v2 = jax.block_until_ready(critic_forward(x2, w_row, b))
    ref2 = x2 @ w_row.T + b
    assert v2.shape == (13, OUT_FEATURES)
    assert jnp.allclose(v2, ref2, atol=1e-5, rtol=1e-5)

    print("KERNEL_OK")
</pallas_src>

<mosaic_0001>
module attributes {stable_mosaic.version = 11 : i64} {
  func.func @_critic_kernel(%arg0: i32, %arg1: memref<8x400xf32, #tpu.memory_space<vmem>>, %arg2: memref<1x400xf32, #tpu.memory_space<vmem>>, %arg3: memref<1x1xf32, #tpu.memory_space<smem>>, %arg4: memref<8x1xf32, #tpu.memory_space<vmem>>) attributes {dimension_semantics = [#tpu.dimension_semantics<parallel>], iteration_bounds = array<i64: 1>, scalar_prefetch = 0 : i64, scratch_operands = 0 : i64, tpu.core_type = #tpu.core_type<tc>, window_params = [{transform_indices = @transform_0, window_bounds = array<i64: 8, 400>}, {pipeline_mode = #tpu.pipeline_mode<synchronous>, transform_indices = @transform_1, window_bounds = array<i64: 1, 400>}, {transform_indices = @transform_2, window_bounds = array<i64: 1, 1>}, {transform_indices = @transform_3, window_bounds = array<i64: 8, 1>}]} {
    %c0 = arith.constant 0 : index
    %c0_0 = arith.constant 0 : index
    %0 = vector.load %arg1[%c0, %c0_0] : memref<8x400xf32, #tpu.memory_space<vmem>>, vector<8x400xf32>
    %c0_1 = arith.constant 0 : index
    %c0_2 = arith.constant 0 : index
    %1 = vector.load %arg2[%c0_1, %c0_2] : memref<1x400xf32, #tpu.memory_space<vmem>>, vector<1x400xf32>
    %2 = vector.broadcast %1 : vector<1x400xf32> to vector<8x400xf32>
    %3 = arith.mulf %0, %2 : vector<8x400xf32>
    %cst = arith.constant dense<0.000000e+00> : vector<8xf32>
    %4 = vector.multi_reduction <add>, %3, %cst [1] : vector<8x400xf32> to vector<8xf32>
    %5 = vector.shape_cast %4 : vector<8xf32> to vector<8x1xf32>
    %c0_3 = arith.constant 0 : index
    %c0_4 = arith.constant 0 : index
    %6 = memref.load %arg3[%c0_3, %c0_4] : memref<1x1xf32, #tpu.memory_space<smem>>
    %7 = vector.broadcast %6 : f32 to vector<8x1xf32>
    %8 = arith.addf %5, %7 : vector<8x1xf32>
    %c0_5 = arith.constant 0 : index
    %c0_6 = arith.constant 0 : index
    %9 = vector.load %arg4[%c0_5, %c0_6] : memref<8x1xf32, #tpu.memory_space<vmem>>, vector<8x1xf32>
    tpu.vector_store %arg4[%c0_5, %c0_6], %8 {strides = array<i32>} : memref<8x1xf32, #tpu.memory_space<vmem>>, vector<8x1xf32>,
    return
  }
  func.func @transform_0(%arg0: i32) -> (i32, i32) {
    %c0_i32 = arith.constant 0 : i32
    %c0_i32_0 = arith.constant 0 : i32
    return %arg0, %c0_i32 : i32, i32
  }
  func.func @transform_1(%arg0: i32) -> (i32, i32) {
    %c0_i32 = arith.constant 0 : i32
    %c0_i32_0 = arith.constant 0 : i32
    %c0_i32_1 = arith.constant 0 : i32
    return %c0_i32, %c0_i32_0 : i32, i32
  }
  func.func @transform_2(%arg0: i32) -> (i32, i32) {
    %c0_i32 = arith.constant 0 : i32
    %c0_i32_0 = arith.constant 0 : i32
    %c0_i32_1 = arith.constant 0 : i32
    return %c0_i32, %c0_i32_0 : i32, i32
  }
  func.func @transform_3(%arg0: i32) -> (i32, i32) {
    %c0_i32 = arith.constant 0 : i32
    %c0_i32_0 = arith.constant 0 : i32
    return %arg0, %c0_i32 : i32, i32
  }
}

</mosaic_0001>

<bundles_post_ra>
// kernel: tpu_custom_call.1
= control target key start
LH: loop header
LB: loop body
LE: loop exit
PB: predicated region body
PF: predicated region fallthrough
CT: control target
= control target key end

     0   :  { %9 = vsyncpa [#allocation4], 0  ;;  %s167_s0 = inlined_call_operand.hbm [shape: f32[8,400], index: 0, kind: input, shape index: {}]   ;;  %s168_s1 = inlined_call_operand.hbm [shape: f32[1,400], index: 1, kind: input, shape index: {}]   ;;  %s169_s2 = inlined_call_operand.<no memory space> [shape: f32[1,1], index: 2, kind: input, shape index: {}]   ;;  %s170_s3 = inlined_call_operand.vmem [shape: f32[8,1], index: 3, kind: output, shape index: {}]  }
   0x1   :  { %10 = vsyncpa [#allocation6], 0  ;;  %s133_s12 = smov [#allocation3]   ;;  %s134_s14 = smov [#allocation5]  }
   0x2   :  { %s17_s13 = sshll.u32 %s133_s12, 4  ;;  %s27_s15 = sshll.u32 %s134_s14, 4  ;;  %s18_s13 = int_to_ptr.vmem [resolvable:$true] %s17_s13  ;;  %s28_s15 = int_to_ptr.vmem [resolvable:$true] %s27_s15 }
   0x3   :  { %s97_s16 = scalar_lea.vmem %s18_s13, 512  ;;  %p102_p1 = scmp.lt.s32.totalorder %s18_s13, %s18_s13 }
   0x4   :  { %p98_p0 = scmp.ne.s32.totalorder %s18_s13, %s97_s16  ;;  %p103_p2 = scmp.lt.s32.totalorder %s97_s16, %s97_s16 }
   0x6   :  { %p104_p3 = por %p103_p2, %p102_p1 }
   0x8   :  { %p105_p4 = pnand %p104_p3, %p98_p0 }
   0xa   :  { %108 = shalt.err (!%p105_p4)
}
   0xb   :  { %20 = dma.hbm_to_vmem [thread:$0]  %s167_s0, 512, %s18_s13, [#allocation4]  }
   0xc   :  { %s117_s19 = scalar_lea.vmem %s28_s15, 64  ;;  %p122_p6 = scmp.lt.s32.totalorder %s28_s15, %s28_s15 }
   0xd   :  { %p118_p5 = scmp.ne.s32.totalorder %s28_s15, %s117_s19  ;;  %p123_p7 = scmp.lt.s32.totalorder %s117_s19, %s117_s19 }
   0xf   :  { %p124_p8 = por %p123_p7, %p122_p6 }
  0x11   :  { %p125_p9 = pnand %p124_p8, %p118_p5 }
  0x13   :  { %128 = shalt.err (!%p125_p9)
}
  0x14   :  { %30 = dma.hbm_to_vmem [thread:$0]  %s168_s1, 64, %s28_s15, [#allocation6]  }
  0x15   :  { %129 = dma.done.wait [#allocation4], 512  }
  0x16   :  { %130 = vsyncadd [#allocation4], 4294966784 }
  0x17   :  { %131 = dma.done.wait [#allocation6], 64  }
  0x18   :  { %132 = vsyncadd [#allocation6], 4294967232  ;;  %v45_v0 = vlaneseq  ;;  %v39_v6 = vld [vmem:[#allocation3] sm:$0xff]  ;;  %v40_v7 = vld [vmem:[#allocation3 + $0x8] sm:$0xff]  ;;  %vm71_vm0 = vcmask 130048   ;;  %v77_v23 = vstv %s169_s2  ;;  %vm79_vm1 = vcmask 7168  }
  0x19   :  { %v41_v8 = vld [vmem:[#allocation3 + $0x10] sm:$0xff]  ;;  %v42_v9 = vld [vmem:[#allocation3 + $0x18] sm:$0xff]  ;;  %v43_v10 = vld [vmem:[#allocation5] sm:$0xf] }
  0x1a   :  { %v46_v1 = vshrl.u32 %v45_v0, 7 }
  0x1c   :  { %v47_v2 = vsub.s32 0, %v46_v1  ;;  %v51_v3 = vsub.s32 1, %v46_v1  ;;  %v55_v4 = vsub.s32 2, %v46_v1  ;;  %v59_v5 = vsub.s32 3, %v46_v1 }
  0x1e   :  { %v48_v11 = vrot.slane %v43_v10, %v47_v2  ;;  %v52_v12 = vrot.slane %v43_v10, %v51_v3  ;;  %v56_v13 = vrot.slane %v43_v10, %v55_v4  ;;  %v60_v14 = vrot.slane %v43_v10, %v59_v5 }
  0x20   :  { %v65_v15 = vmul.f32 %v48_v11, %v39_v6  ;;  %v66_v16 = vmul.f32 %v52_v12, %v40_v7  ;;  %v67_v17 = vmul.f32 %v56_v13, %v41_v8  ;;  %v68_v18 = vmul.f32 %v60_v14, %v42_v9 }
  0x22   :  { %v69_v19 = vadd.f32 %v66_v16, %v65_v15  ;;  %v72_v20 = vsel %vm71_vm0, %v68_v18, 0.0 }
  0x24   :  { %v70_v21 = vadd.f32 %v69_v19, %v67_v17 }
  0x26   :  { %v73_v22 = vadd.f32 %v72_v20, %v70_v21 }
  0x28   :  { %74 = vadd.xlane.f32.xlu0 %v73_v22 }
  0xb1   :  { %v75_v24 = vpop.xlane.xlu0 %74 }
  0xb2   :  { %v78_v25 = vadd.f32 %v77_v23, %v75_v24 }
  0xb4   :  { %80 = vst.msk [vmem:[%s170_s3] sm:$0xff] %vm79_vm1, %v78_v25 }
  0xb5   :  { %85 = vsyncpa [#allocation4], 1 }
  0xb6   :  { %86 = vsyncpa [#allocation6], 1 }

</bundles_post_ra>
